<compile_context>
chip_gen: v7x
topology: tpu7x:2x2x1
jax: 0.10.0
libtpu: 0.0.40
codegen_flags: <defaults>
</compile_context>

<pallas_src>
import functools

import jax
import jax.numpy as jnp
from jax.experimental import pallas as pl
from jax.experimental.pallas import tpu as pltpu


def _avgpool_kernel(x_ref, o_ref, pad_ref, *, cin, h, w, kh, kw, oh, ow,
                    stride, pad, cout, fill):
    # x_ref:   (BB, Cin, H*W)   lane-dense input block (VMEM)
    # o_ref:   (BB, Cout, OH*OW) lane-dense output block (VMEM)
    # pad_ref: (BB, Hp, Wp)     f32 scratch used as the zero-padded plane
    bb = x_ref.shape[0]
    hp, wp = h + 2 * pad, w + 2 * pad

    # ---- Channel reduction on the lane-dense view (single sublane reduce). ----
    x = x_ref[...].astype(jnp.float32)          # (BB, Cin, H*W)
    s = jnp.sum(x, axis=1)                      # (BB, H*W)

    # Single layout change: flat row -> (H, W) plane per batch element.
    s = s.reshape(bb, h, w)                     # (BB, H, W)

    # ---- Zero-pad via pre-zeroed scratch (one interior store). ----
    if pad > 0:
        pad_ref[...] = jnp.zeros_like(pad_ref)
        pad_ref[:, pad:pad + h, pad:pad + w] = s

        def tap(rs, cs):
            return pad_ref[:, rs, cs]
    else:
        def tap(rs, cs):                        # no padding: slice the value directly
            return s[:, rs, cs]

    # ---- Separable window sum: KW horizontal adds, then KH vertical adds. ----
    wcols = wp - kw + 1
    hrows = hp - kh + 1
    hsum = tap(slice(None), slice(0, wcols))              # (BB, Hp, wcols)
    for j in range(1, kw):
        hsum = hsum + tap(slice(None), slice(j, j + wcols))
    vsum = hsum[:, 0:hrows, :]                            # (BB, hrows, wcols)
    for i in range(1, kh):
        vsum = vsum + hsum[:, i:i + hrows, :]

    # Apply the stride subsample once at the end.
    if stride > 1:
        acc = vsum[:, 0:stride * (oh - 1) + 1:stride,
                      0:stride * (ow - 1) + 1:stride]     # (BB, OH, OW)
    else:
        acc = vsum                                        # hrows == OH, wcols == OW

    # ---- Scale + cast the single unique row, replicate over Cout on the store. ----
    row = (acc * fill).astype(o_ref.dtype).reshape(bb, 1, oh * ow)
    o_ref[...] = jnp.broadcast_to(row, (bb, cout, oh * ow))


def avg_pool2d_channels(x_nchw, *, out_channels, kernel_size, padding=0, stride=1):
    """conv2d(x, full((Cout, Cin, KH, KW), 1/(KH*KW*Cin)), bias=None, stride, padding),
    NCHW in / NCHW out (torch semantics)."""
    n, cin, h, w = x_nchw.shape
    kh, kw = (kernel_size if hasattr(kernel_size, "__len__")
              else (kernel_size, kernel_size))
    fill = 1.0 / (kh * kw * cin)

    hp, wp = h + 2 * padding, w + 2 * padding
    oh = (hp - kh) // stride + 1
    ow = (wp - kw) // stride + 1

    # Lane-dense view: free trailing-dim reshape of contiguous NCHW.
    x_flat = x_nchw.reshape(n, cin, h * w)

    # Fold as many batch elements per grid step as comfortably fit VMEM
    # (cap ~8 MiB of double-buffered I/O + scratch -> far under the 32 MiB
    # scoped default on v7x, even further under v5e/v6e).  Per-step overhead
    # (~0.35 us) and DMA size are the real costs here, not compute.
    in_bytes = cin * h * w * 4
    out_bytes = out_channels * oh * ow * 4
    pad_bytes = hp * wp * 4
    per_b = 2 * (in_bytes + out_bytes) + pad_bytes
    cap = max(1, (8 << 20) // max(per_b, 1))
    # Largest divisor of n not exceeding the cap (avoids partial blocks).
    bb = max(d for d in range(1, min(n, cap) + 1) if n % d == 0)
    grid_n = n // bb
    # NOTE(v7x megacore): when grid_n > 1 the 'parallel' axis is sharded across
    # both TensorCores; with grid_n == 1 everything stays on one TC, which is
    # faster for ~us-sized problems like the test shape.

    kernel = functools.partial(
        _avgpool_kernel, cin=cin, h=h, w=w, kh=kh, kw=kw, oh=oh, ow=ow,
        stride=stride, pad=padding, cout=out_channels, fill=fill)

    out_flat = pl.pallas_call(
        kernel,
        out_shape=jax.ShapeDtypeStruct((n, out_channels, oh * ow), x_nchw.dtype),
        grid_spec=pltpu.PrefetchScalarGridSpec(
            num_scalar_prefetch=0,
            grid=(grid_n,),
            in_specs=[pl.BlockSpec((bb, cin, h * w), lambda g: (g, 0, 0))],
            out_specs=pl.BlockSpec((bb, out_channels, oh * ow), lambda g: (g, 0, 0)),
            scratch_shapes=[pltpu.VMEM((bb, hp, wp), jnp.float32)],
        ),
        compiler_params=pltpu.CompilerParams(
            dimension_semantics=("parallel",) if grid_n > 1 else ("arbitrary",)),
    )(x_flat)

    # Trailing-dim reshape is layout-free in row-major; result is torch NCHW.
    return out_flat.reshape(n, out_channels, oh, ow)


def make_avgpool_weight(in_channels, out_channels, kernel_size):
    kh, kw = (kernel_size if hasattr(kernel_size, "__len__")
              else (kernel_size, kernel_size))
    fill_value = 1.0 / (kh * kw * in_channels)
    # Same deterministic buffer as torch.full((out, in, kh, kw), fill_value);
    # only used for the reference check — the kernel itself needs no weight.
    return jnp.full((out_channels, in_channels, kh, kw), fill_value, dtype=jnp.float32)


if __name__ == "__main__":
    batch, in_channels, out_channels = 2, 4, 8
    spatial, kernel_size, padding, stride = 16, 3, 1, 1

    key = jax.random.PRNGKey(0)
    x = jax.random.normal(key, (batch, in_channels, spatial, spatial), dtype=jnp.float32)

    out = avg_pool2d_channels(x, out_channels=out_channels, kernel_size=kernel_size,
                              padding=padding, stride=stride)
    out = jax.block_until_ready(out)

    # Reference: XLA conv with the module's constant weight (torch conv2d semantics).
    weight = make_avgpool_weight(in_channels, out_channels, kernel_size)
    ref = jax.lax.conv_general_dilated(
        x, weight, window_strides=(stride, stride),
        padding=[(padding, padding), (padding, padding)],
        dimension_numbers=("NCHW", "OIHW", "NCHW"))
    assert out.shape == (batch, out_channels, spatial, spatial)
    assert jnp.allclose(out, ref, atol=1e-5, rtol=1e-5)

    print("KERNEL_OK")
</pallas_src>

<mosaic_0001>
module attributes {stable_mosaic.version = 11 : i64} {
  func.func @_avgpool_kernel(%arg0: i32, %arg1: memref<2x4x256xf32, #tpu.memory_space<vmem>>, %arg2: memref<2x8x256xf32, #tpu.memory_space<vmem>>, %arg3: memref<2x18x18xf32, #tpu.memory_space<vmem>>) attributes {dimension_semantics = [#tpu.dimension_semantics<arbitrary>], iteration_bounds = array<i64: 1>, scalar_prefetch = 0 : i64, scratch_operands = 1 : i64, tpu.core_type = #tpu.core_type<tc>, window_params = [{transform_indices = @transform_0, window_bounds = array<i64: 2, 4, 256>}, {transform_indices = @transform_1, window_bounds = array<i64: 2, 8, 256>}]} {
    %c0 = arith.constant 0 : index
    %c0_0 = arith.constant 0 : index
    %c0_1 = arith.constant 0 : index
    %0 = vector.load %arg1[%c0, %c0_0, %c0_1] : memref<2x4x256xf32, #tpu.memory_space<vmem>>, vector<2x4x256xf32>
    %cst = arith.constant dense<0.000000e+00> : vector<2x256xf32>
    %1 = vector.multi_reduction <add>, %0, %cst [1] : vector<2x4x256xf32> to vector<2x256xf32>
    %2 = vector.shape_cast %1 : vector<2x256xf32> to vector<2x16x16xf32>
    %cst_2 = arith.constant 0.000000e+00 : f32
    %3 = vector.broadcast %cst_2 : f32 to vector<2x18x18xf32>
    %c0_3 = arith.constant 0 : index
    %c0_4 = arith.constant 0 : index
    %c0_5 = arith.constant 0 : index
    %4 = vector.load %arg3[%c0_3, %c0_4, %c0_5] : memref<2x18x18xf32, #tpu.memory_space<vmem>>, vector<2x18x18xf32>
    tpu.vector_store %arg3[%c0_3, %c0_4, %c0_5], %3 {strides = array<i32>} : memref<2x18x18xf32, #tpu.memory_space<vmem>>, vector<2x18x18xf32>,
    %c0_6 = arith.constant 0 : index
    %c1 = arith.constant 1 : index
    %c1_7 = arith.constant 1 : index
    %5 = vector.load %arg3[%c0_6, %c1, %c1_7] : memref<2x18x18xf32, #tpu.memory_space<vmem>>, vector<2x16x16xf32>
    tpu.vector_store %arg3[%c0_6, %c1, %c1_7], %2 {strides = array<i32>} : memref<2x18x18xf32, #tpu.memory_space<vmem>>, vector<2x16x16xf32>,
    %c0_8 = arith.constant 0 : index
    %c0_9 = arith.constant 0 : index
    %c0_10 = arith.constant 0 : index
    %6 = vector.load %arg3[%c0_8, %c0_9, %c0_10] : memref<2x18x18xf32, #tpu.memory_space<vmem>>, vector<2x18x16xf32>
    %c0_11 = arith.constant 0 : index
    %c0_12 = arith.constant 0 : index
    %c1_13 = arith.constant 1 : index
    %7 = vector.load %arg3[%c0_11, %c0_12, %c1_13] : memref<2x18x18xf32, #tpu.memory_space<vmem>>, vector<2x18x16xf32>
    %8 = arith.addf %6, %7 : vector<2x18x16xf32>
    %c0_14 = arith.constant 0 : index
    %c0_15 = arith.constant 0 : index
    %c2 = arith.constant 2 : index
    %9 = vector.load %arg3[%c0_14, %c0_15, %c2] : memref<2x18x18xf32, #tpu.memory_space<vmem>>, vector<2x18x16xf32>
    %10 = arith.addf %8, %9 : vector<2x18x16xf32>
    %11 = vector.extract_strided_slice %10 {offsets = [0, 0, 0], sizes = [2, 16, 16], strides = [1, 1, 1]} : vector<2x18x16xf32> to vector<2x16x16xf32>
    %12 = vector.extract_strided_slice %10 {offsets = [0, 1, 0], sizes = [2, 16, 16], strides = [1, 1, 1]} : vector<2x18x16xf32> to vector<2x16x16xf32>
    %13 = arith.addf %11, %12 : vector<2x16x16xf32>
    %14 = vector.extract_strided_slice %10 {offsets = [0, 2, 0], sizes = [2, 16, 16], strides = [1, 1, 1]} : vector<2x18x16xf32> to vector<2x16x16xf32>
    %15 = arith.addf %13, %14 : vector<2x16x16xf32>
    %cst_16 = arith.constant 0.027777778 : f32
    %16 = vector.broadcast %cst_16 : f32 to vector<2x16x16xf32>
    %17 = arith.mulf %15, %16 : vector<2x16x16xf32>
    %18 = vector.shape_cast %17 : vector<2x16x16xf32> to vector<2x1x256xf32>
    %19 = vector.shape_cast %18 : vector<2x1x256xf32> to vector<2x1x256xf32>
    %20 = vector.broadcast %19 : vector<2x1x256xf32> to vector<2x8x256xf32>
    %c0_17 = arith.constant 0 : index
    %c0_18 = arith.constant 0 : index
    %c0_19 = arith.constant 0 : index
    %21 = vector.load %arg2[%c0_17, %c0_18, %c0_19] : memref<2x8x256xf32, #tpu.memory_space<vmem>>, vector<2x8x256xf32>
    tpu.vector_store %arg2[%c0_17, %c0_18, %c0_19], %20 {strides = array<i32>} : memref<2x8x256xf32, #tpu.memory_space<vmem>>, vector<2x8x256xf32>,
    return
  }
  func.func @transform_0(%arg0: i32) -> (i32, i32, i32) {
    %c0_i32 = arith.constant 0 : i32
    %c0_i32_0 = arith.constant 0 : i32
    %c0_i32_1 = arith.constant 0 : i32
    return %arg0, %c0_i32, %c0_i32_0 : i32, i32, i32
  }
  func.func @transform_1(%arg0: i32) -> (i32, i32, i32) {
    %c0_i32 = arith.constant 0 : i32
    %c0_i32_0 = arith.constant 0 : i32
    %c0_i32_1 = arith.constant 0 : i32
    return %arg0, %c0_i32, %c0_i32_0 : i32, i32, i32
  }
}

</mosaic_0001>

<bundles_post_ra>
// kernel: tpu_custom_call.1
= control target key start
LH: loop header
LB: loop body
LE: loop exit
PB: predicated region body
PF: predicated region fallthrough
CT: control target
= control target key end

     0   :  { %6 = vsyncpa [#allocation4], 0  ;;  %s1132_s0 = inlined_call_operand.hbm [shape: f32[2,4,256], index: 0, kind: input, shape index: {}]   ;;  %s1133_s1 = inlined_call_operand.hbm [shape: f32[2,8,256], index: 1, kind: output, shape index: {}]  }
   0x1   :  { %7 = vsyncpa [#allocation5], 0  ;;  %s854_s6 = smov [#allocation3]   ;;  %s806_s10 = scalar_lea.hbm %s1132_s0, 256 }
   0x2   :  { %s13_s7 = sshll.u32 %s854_s6, 4  ;;  %p807_p0 = scmp.ne.s32.totalorder %s1132_s0, %s806_s10  ;;  %s14_s7 = int_to_ptr.vmem [resolvable:$true] %s13_s7 }
   0x3   :  { %p810_p1 = scmp.lt.u32.totalorder %s806_s10, %s1132_s0 }
   0x5   :  { %p812_p2 = pnand %p810_p1, %p807_p0 }
   0x7   :  { %815 = shalt.err (!%p812_p2)
}
   0x8   :  { %s816_s15 = scalar_lea.vmem %s14_s7, 256  ;;  %p821_p4 = scmp.lt.s32.totalorder %s14_s7, %s14_s7 }
   0x9   :  { %p817_p3 = scmp.ne.s32.totalorder %s14_s7, %s816_s15  ;;  %p822_p5 = scmp.lt.s32.totalorder %s816_s15, %s816_s15 }
   0xb   :  { %p823_p6 = por %p822_p5, %p821_p4 }
   0xd   :  { %p824_p7 = pnand %p823_p6, %p817_p3 }
   0xf   :  { %827 = shalt.err (!%p824_p7)
}
  0x10   :  { %s855_s16 = smov 128   ;;  %s856_s17 = smov 8  }
  0x11   :  { %19 = dma.hbm_to_vmem [thread:$0]  %s1132_s0, 256, %s14_s7, [#allocation4], %s855_s16, %s855_s16, %s856_s17  }
  0x12   :  { %850 = dma.done.wait [#allocation4], 256  }
  0x13   :  { %851 = vsyncadd [#allocation4], 4294967040  ;;  %vm31_vm0 = vcmask 1043456   ;;  %v24_v0 = vld [vmem:[#allocation3 + $0x8] sm:$0xff]  ;;  %v23_v1 = vld [vmem:[#allocation3] sm:$0xff]  ;;  %s857_s0 = smov 80   ;;  %v173_v55 = vlaneseq }
  0x14   :  { %v46_v2 = vsel %vm31_vm0, %v24_v0, 0.0  ;;  %v28_v3 = vcombine.high %v24_v0, %v24_v0  ;;  %v32_v6 = vsel %vm31_vm0, %v23_v1, 0.0  ;;  %s858_s20 = smov 112   ;;  %v27_v19 = vcombine.high %v23_v1, %v23_v1  ;;  %s859_s21 = smov 64  }
  0x15   :  { %v47_v4 = vrot.slane %v46_v2, 4  ;;  %v33_v11 = vrot.slane %v32_v6, 4  ;;  %s860_s22 = smov 96   ;;  %s861_s23 = smov 32   ;;  %vm121_vm1 = vcmask 1041409   ;;  %vm269_vm2 = vcmask 146432  }
  0x16   :  { %v53_v5 = vsel %vm31_vm0, %v28_v3, 0.0  ;;  %v39_v22 = vsel %vm31_vm0, %v27_v19, 0.0  ;;  %s862_s24 = smov 48   ;;  %s863_s25 = smov 16   ;;  %v864_v36 = vmov 0.0   ;;  %v945_v63 = vshrl.u32 %v173_v55, 7 }
  0x17   :  { %v48_v7 = vadd.f32 %v47_v4, %v46_v2  ;;  %v54_v8 = vrot.slane %v53_v5, 4  ;;  %v34_v15 = vadd.f32 %v33_v11, %v32_v6  ;;  %v40_v25 = vrot.slane %v39_v22, 4  ;;  %270 = vst.msk [vmem:[#allocation2] sm:$0xff] %vm269_vm2, %v864_v36  ;;  %271 = vst.msk [vmem:[#allocation2 + $0x8] sm:$0xff] %vm269_vm2, %v864_v36  ;;  %s867_s26 = smov 1   ;;  %s868_s27 = smov 127  }
  0x18   :  { %274 = vst.msk [vmem:[#allocation2 + $0x18] sm:$0xff] %vm269_vm2, %v864_v36  ;;  %275 = vst.msk [vmem:[#allocation2 + $0x20] sm:$0xff] %vm269_vm2, %v864_v36  ;;  %v865_v53 = vmov 1983009808   ;;  %v866_v3 = vmov 1934713408  }
  0x19   :  { %v49_v9 = vrot.slane %v48_v7, 2  ;;  %v55_v10 = vadd.f32 %v54_v8, %v53_v5  ;;  %v35_v18 = vrot.slane %v34_v15, 2  ;;  %v41_v28 = vadd.f32 %v40_v25, %v39_v22  ;;  %s869_s28 = smov 126   ;;  %s870_s29 = smov [#allocation6]  }
  0x1a   :  { %v171_v54 = vunpack.c.l.s4 %v865_v53  ;;  %v203_v4 = vunpack.c.l.s4 %v866_v3  ;;  %vm272_vm3 = vcmask 140288   ;;  %vm293_vm4 = vcmask 138248   ;;  %s774_s30 = sshll.u32 %s870_s29, 4  ;;  %s775_s30 = int_to_ptr.vmem [resolvable:$true] %s774_s30 }
  0x1b   :  { %v50_v12 = vadd.f32 %v49_v9, %v48_v7  ;;  %v56_v14 = vrot.slane %v55_v10, 2  ;;  %v36_v21 = vadd.f32 %v35_v18, %v34_v15  ;;  %v42_v30 = vrot.slane %v41_v28, 2  ;;  %273 = vst.msk [vmem:[#allocation2 + $0x10] sm:$0x3] %vm272_vm3, %v864_v36  ;;  %276 = vst.msk [vmem:[#allocation2 + $0x28] sm:$0x3] %vm272_vm3, %v864_v36  ;;  %p833_p9 = scmp.lt.s32.totalorder %s775_s30, %s775_s30 }
  0x1c   :  { %v172_v62 = vunpack.c.0.s8 %v171_v54  ;;  %v204_v15 = vunpack.c.0.s8 %v203_v4  ;;  %vm364_vm5 = vcmask 1046528   ;;  %vm383_vm6 = vcmask 1045504   ;;  %s828_s2 = scalar_lea.vmem %s775_s30, 512 }
  0x1d   :  { %v51_v13 = vrot.slane %v50_v12, 1  ;;  %v57_v17 = vadd.f32 %v56_v14, %v55_v10  ;;  %v37_v24 = vrot.slane %v36_v21, 1  ;;  %v43_v31 = vadd.f32 %v42_v30, %v41_v28  ;;  %p829_p8 = scmp.ne.s32.totalorder %s775_s30, %s828_s2  ;;  %p834_p10 = scmp.lt.s32.totalorder %s828_s2, %s828_s2 }
  0x1e   :  { %v951_v10 = vsub.s32 %v172_v62, %v945_v63  ;;  %vm714_vm7 = vcmask 130048   ;;  %vm717_vm8 = vcmask 261120   ;;  %vm720_vm9 = vcmask 392192  }
  0x1f   :  { %v52_v16 = vadd.f32 %v51_v13, %v50_v12  ;;  %v58_v20 = vrot.slane %v57_v17, 1  ;;  %v38_v27 = vadd.f32 %v37_v24, %v36_v21  ;;  %v44_v32 = vrot.slane %v43_v31, 1  ;;  %p835_p11 = por %p834_p10, %p833_p9 }
  0x20   :  { %vm723_vm10 = vcmask 523264   ;;  %vm726_vm11 = vcmask 654336   ;;  %vm729_vm12 = vcmask 785408   ;;  %vm732_vm13 = vcmask 916480  }
  0x21   :  { %72 = vrot.lane.b32.xlu1 %v52_v16, %s857_s0  ;;  %64 = vrot.lane.b32.xlu0 %v52_v16, %s858_s20  ;;  %v59_v23 = vadd.f32 %v58_v20, %v57_v17  ;;  %v120_v26 = vrot.slane %v52_v16, 7  ;;  %v45_v33 = vadd.f32 %v44_v32, %v43_v31  ;;  %p836_p12 = pnand %p835_p11, %p829_p8 }
  0x23   :  { %v907_v29 = vsel %vm121_vm1, %v120_v26, %v38_v27  ;;  %v137_v34 = vrot.slane %v59_v23, 7  ;;  %v960_v26 = vsub.s32 %v204_v15, %v945_v63 }
  0x25   :  { %76 = vrot.lane.b32.xlu1 %v52_v16, %s859_s21  ;;  %68 = vrot.lane.b32.xlu0 %v52_v16, %s860_s22  ;;  %v918_v35 = vsel %vm121_vm1, %v137_v34, %v45_v33 }
  0x29   :  { %84 = vrot.lane.b32.xlu1 %v52_v16, %s861_s23  ;;  %80 = vrot.lane.b32.xlu0 %v52_v16, %s862_s24 }
  0x2d   :  { %88 = vrot.lane.b32.xlu0 %v52_v16, %s863_s25  ;;  %94 = vrot.lane.b32.xlu1 %v59_v23, %s858_s20 }
  0x31   :  { %98 = vrot.lane.b32.xlu0 %v59_v23, %s860_s22  ;;  %102 = vrot.lane.b32.xlu1 %v59_v23, %s857_s0 }
  0x35   :  { %106 = vrot.lane.b32.xlu0 %v59_v23, %s859_s21  ;;  %110 = vrot.lane.b32.xlu1 %v59_v23, %s862_s24 }
  0x39   :  { %114 = vrot.lane.b32.xlu0 %v59_v23, %s861_s23  ;;  %118 = vrot.lane.b32.xlu1 %v59_v23, %s863_s25 }
  0x3d   :  { %66 = vrot.lane.b32.xlu1 %v38_v27, %s860_s22  ;;  %62 = vrot.lane.b32.xlu0 %v38_v27, %s858_s20 }
  0x41   :  { %74 = vrot.lane.b32.xlu1 %v38_v27, %s859_s21  ;;  %70 = vrot.lane.b32.xlu0 %v38_v27, %s857_s0 }
  0x45   :  { %82 = vrot.lane.b32.xlu1 %v38_v27, %s861_s23  ;;  %78 = vrot.lane.b32.xlu0 %v38_v27, %s862_s24 }
  0x49   :  { %86 = vrot.lane.b32.xlu0 %v38_v27, %s863_s25  ;;  %92 = vrot.lane.b32.xlu1 %v45_v33, %s858_s20 }
  0x4d   :  { %96 = vrot.lane.b32.xlu0 %v45_v33, %s860_s22  ;;  %100 = vrot.lane.b32.xlu1 %v45_v33, %s857_s0 }
  0x51   :  { %104 = vrot.lane.b32.xlu0 %v45_v33, %s859_s21  ;;  %108 = vrot.lane.b32.xlu1 %v45_v33, %s862_s24 }
  0x55   :  { %112 = vrot.lane.b32.xlu0 %v45_v33, %s861_s23  ;;  %116 = vrot.lane.b32.xlu1 %v45_v33, %s863_s25 }
  0x93   :  { %v73_v37 = vpop.permute.xlu1 %72  ;;  %v65_v38 = vpop.permute.xlu0 %64 }
  0x94   :  { %v127_v56 = vrot.slane %v73_v37, 7  ;;  %v123_v59 = vrot.slane %v65_v38, 7 }
  0x97   :  { %v77_v39 = vpop.permute.xlu1 %76  ;;  %v69_v40 = vpop.permute.xlu0 %68 }
  0x98   :  { %v125_v60 = vrot.slane %v69_v40, 7  ;;  %v129_v8 = vrot.slane %v77_v39, 7 }
  0x9b   :  { %v85_v41 = vpop.permute.xlu1 %84  ;;  %v81_v42 = vpop.permute.xlu0 %80 }
  0x9c   :  { %v133_v0 = vrot.slane %v85_v41, 7  ;;  %v131_v12 = vrot.slane %v81_v42, 7 }
  0x9f   :  { %v89_v43 = vpop.permute.xlu0 %88  ;;  %v95_v44 = vpop.permute.xlu1 %94 }
  0xa0   :  { %v135_v13 = vrot.slane %v89_v43, 7  ;;  %v139_v32 = vrot.slane %v95_v44, 7 }
  0xa3   :  { %v99_v45 = vpop.permute.xlu0 %98  ;;  %v103_v46 = vpop.permute.xlu1 %102 }
  0xa4   :  { %v141_v24 = vrot.slane %v99_v45, 7  ;;  %v143_v25 = vrot.slane %v103_v46, 7 }
  0xa7   :  { %v936_v47 = vpop.permute.xlu0 %106  ;;  %v938_v48 = vpop.permute.xlu1 %110 }
  0xa8   :  { %v145_v46 = vrot.slane %v936_v47, 7 }
  0xab   :  { %v940_v49 = vpop.permute.xlu0 %114  ;;  %v942_v50 = vpop.permute.xlu1 %118 }
  0xaf   :  { %v67_v51 = vpop.permute.xlu1 %66  ;;  %v63_v52 = vpop.permute.xlu0 %62 }
  0xb0   :  { %v126_v1 = vsel %vm121_vm1, %v125_v60, %v67_v51  ;;  %v124_v2 = vsel %vm121_vm1, %v123_v59, %v63_v52  ;;  %v147_v51 = vrot.slane %v938_v48, 7  ;;  %v149_v52 = vrot.slane %v940_v49, 7 }
  0xb1   :  { %v169_v11 = vcombine.low %v907_v29, %v126_v1 }
  0xb3   :  { %v75_v57 = vpop.permute.xlu1 %74  ;;  %v71_v58 = vpop.permute.xlu0 %70  ;;  %v176_v22 = vrot.slane %v169_v11, %v951_v10 }
  0xb4   :  { %v128_v61 = vsel %vm121_vm1, %v127_v56, %v71_v58  ;;  %v130_v14 = vsel %vm121_vm1, %v129_v8, %v75_v57 }
  0xb5   :  { %v177_v5 = vcombine.low %v124_v2, %v128_v61 }
  0xb7   :  { %v83_v6 = vpop.permute.xlu1 %82  ;;  %v79_v7 = vpop.permute.xlu0 %78  ;;  %v184_v16 = vrot.slane %v177_v5, %v951_v10 }
  0xb8   :  { %v134_v9 = vsel %vm121_vm1, %v133_v0, %v83_v6  ;;  %v132_v20 = vsel %vm121_vm1, %v131_v12, %v79_v7 }
  0xb9   :  { %v185_v17 = vcombine.low %v130_v14, %v134_v9  ;;  %v201_v27 = vcombine.low %v176_v22, %v184_v16 }
  0xbb   :  { %v87_v18 = vpop.permute.xlu0 %86  ;;  %v93_v19 = vpop.permute.xlu1 %92  ;;  %v192_v28 = vrot.slane %v185_v17, %v951_v10  ;;  %v208_v43 = vrot.slane %v201_v27, %v960_v26 }
  0xbc   :  { %v136_v21 = vsel %vm121_vm1, %v135_v13, %v87_v18  ;;  %v140_v38 = vsel %vm121_vm1, %v139_v32, %v93_v19 }
  0xbd   :  { %v193_v23 = vcombine.low %v132_v20, %v136_v21 }
  0xbf   :  { %v200_v29 = vrot.slane %v193_v23, %v951_v10  ;;  %v97_v30 = vpop.permute.xlu0 %96  ;;  %v101_v31 = vpop.permute.xlu1 %100 }
  0xc0   :  { %v142_v33 = vsel %vm121_vm1, %v141_v24, %v97_v30  ;;  %v144_v34 = vsel %vm121_vm1, %v143_v25, %v101_v31 }
  0xc1   :  { %v209_v37 = vcombine.low %v192_v28, %v200_v29  ;;  %v219_v39 = vcombine.low %v918_v35, %v142_v33  ;;  %v227_v40 = vcombine.low %v140_v38, %v144_v34  ;;  %v151_v35 = vrot.slane %v942_v50, 7 }
  0xc3   :  { %v105_v41 = vpop.permute.xlu0 %104  ;;  %v109_v42 = vpop.permute.xlu1 %108  ;;  %v216_v45 = vrot.slane %v209_v37, %v960_v26  ;;  %v226_v53 = vrot.slane %v219_v39, %v951_v10  ;;  %v234_v54 = vrot.slane %v227_v40, %v951_v10 }
  0xc4   :  { %v146_v57 = vsel %vm121_vm1, %v145_v46, %v105_v41  ;;  %v148_v58 = vsel %vm121_vm1, %v147_v51, %v109_v42 }
  0xc5   :  { %v217_v44 = vcombine.low %v208_v43, %v216_v45  ;;  %v218_v60 = vcombine.high %v208_v43, %v216_v45  ;;  %v251_v50 = vcombine.low %v226_v53, %v234_v54 }
  0xc7   :  { %281 = vrot.lane.b32.xlu0 %v217_v44, %s867_s26  ;;  %v113_v55 = vpop.permute.xlu0 %112  ;;  %v117_v56 = vpop.permute.xlu1 %116  ;;  %v258_v1 = vrot.slane %v251_v50, %v960_v26 }
  0xc8   :  { %v150_v47 = vsel %vm121_vm1, %v149_v52, %v113_v55  ;;  %v152_v48 = vsel %vm121_vm1, %v151_v35, %v117_v56 }
  0xc9   :  { %v235_v59 = vcombine.low %v146_v57, %v150_v47  ;;  %v243_v49 = vcombine.low %v148_v58, %v152_v48 }
  0xcb   :  { %v242_v61 = vrot.slane %v235_v59, %v951_v10  ;;  %v250_v62 = vrot.slane %v243_v49, %v951_v10  ;;  %285 = vrot.lane.b32.xlu0 %v218_v60, %s867_s26 }
  0xcd   :  { %v259_v0 = vcombine.low %v242_v61, %v250_v62 }
  0xcf   :  { %v266_v2 = vrot.slane %v259_v0, %v960_v26 }
  0xd1   :  { %v267_v3 = vcombine.low %v258_v1, %v266_v2  ;;  %v268_v4 = vcombine.high %v258_v1, %v266_v2 }
  0xd3   :  { %283 = vrot.lane.b32.xlu1 %v267_v3, %s867_s26 }
  0xd7   :  { %287 = vrot.lane.b32.xlu1 %v268_v4, %s867_s26 }
 0x139   :  { %v282_v5 = vpop.permute.xlu0 %281 }
 0x13a   :  { %294 = vst.msk [vmem:[#allocation2 + $0x1] sm:$0xff] %vm293_vm4, %v282_v5 }
 0x13d   :  { %v286_v6 = vpop.permute.xlu0 %285 }
 0x13e   :  { %296 = vst.msk [vmem:[#allocation2 + $0x19] sm:$0xff] %vm293_vm4, %v286_v6 }
 0x141   :  { %v298_v7 = vld [vmem:[#allocation2] sm:$0xff] }
 0x142   :  { %310 = vrot.lane.b32.xlu0 %v298_v7, %s868_s27 }
 0x145   :  { %v284_v8 = vpop.permute.xlu1 %283  ;;  %v301_v9 = vld [vmem:[#allocation2 + $0x18] sm:$0xff] }
 0x146   :  { %295 = vst.msk [vmem:[#allocation2 + $0x9] sm:$0xff] %vm293_vm4, %v284_v8  ;;  %334 = vrot.lane.b32.xlu0 %v298_v7, %s869_s28  ;;  %316 = vrot.lane.b32.xlu1 %v301_v9, %s868_s27 }
 0x149   :  { %v288_v11 = vpop.permute.xlu1 %287 }
 0x14a   :  { %297 = vst.msk [vmem:[#allocation2 + $0x21] sm:$0xff] %vm293_vm4, %v288_v11  ;;  %340 = vrot.lane.b32.xlu1 %v301_v9, %s869_s28 }
 0x14d   :  { %v300_v12 = vld [vmem:[#allocation2 + $0x10] sm:$0x3]  ;;  %v299_v13 = vld [vmem:[#allocation2 + $0x8] sm:$0xff] }
 0x14e   :  { %314 = vrot.lane.b32.xlu0 %v300_v12, %s868_s27  ;;  %312 = vrot.lane.b32.xlu1 %v299_v13, %s868_s27 }
 0x151   :  { %v303_v14 = vld [vmem:[#allocation2 + $0x28] sm:$0x3]  ;;  %v302_v15 = vld [vmem:[#allocation2 + $0x20] sm:$0xff] }
 0x152   :  { %320 = vrot.lane.b32.xlu1 %v303_v14, %s868_s27  ;;  %318 = vrot.lane.b32.xlu0 %v302_v15, %s868_s27 }
 0x156   :  { %336 = vrot.lane.b32.xlu1 %v299_v13, %s869_s28  ;;  %338 = vrot.lane.b32.xlu0 %v300_v12, %s869_s28 }
 0x15a   :  { %344 = vrot.lane.b32.xlu1 %v303_v14, %s869_s28  ;;  %342 = vrot.lane.b32.xlu0 %v302_v15, %s869_s28 }
 0x1b4   :  { %v311_v16 = vpop.permute.xlu0 %310 }
 0x1b5   :  { %v328_v22 = vadd.f32 %v311_v16, %v298_v7 }
 0x1b8   :  { %v317_v17 = vpop.permute.xlu1 %316  ;;  %v335_v18 = vpop.permute.xlu0 %334 }
 0x1b9   :  { %v352_v25 = vadd.f32 %v335_v18, %v328_v22  ;;  %v331_v29 = vadd.f32 %v317_v17, %v301_v9 }
 0x1bb   :  { %v365_v34 = vrot.slane %v352_v25, 1  ;;  %v384_v46 = vrot.slane %v352_v25, 2 }
 0x1bc   :  { %v341_v19 = vpop.permute.xlu1 %340 }
 0x1bd   :  { %v355_v37 = vadd.f32 %v341_v19, %v331_v29 }
 0x1bf   :  { %v370_v56 = vrot.slane %v355_v37, 1  ;;  %v389_v61 = vrot.slane %v355_v37, 2 }
 0x1c0   :  { %v315_v20 = vpop.permute.xlu0 %314  ;;  %v313_v21 = vpop.permute.xlu1 %312 }
 0x1c1   :  { %v330_v27 = vadd.f32 %v315_v20, %v300_v12  ;;  %v329_v28 = vadd.f32 %v313_v21, %v299_v13 }
 0x1c4   :  { %v319_v23 = vpop.permute.xlu0 %318  ;;  %v321_v24 = vpop.permute.xlu1 %320 }
 0x1c5   :  { %v332_v42 = vadd.f32 %v319_v23, %v302_v15  ;;  %v333_v43 = vadd.f32 %v321_v24, %v303_v14 }
 0x1c8   :  { %v339_v30 = vpop.permute.xlu0 %338  ;;  %v337_v31 = vpop.permute.xlu1 %336 }
 0x1c9   :  { %v354_v32 = vadd.f32 %v339_v30, %v330_v27  ;;  %v353_v33 = vadd.f32 %v337_v31, %v329_v28 }
 0x1cb   :  { %v368_v38 = vrot.slane %v354_v32, 1  ;;  %v387_v39 = vrot.slane %v354_v32, 2  ;;  %v366_v40 = vrot.slane %v353_v33, 1  ;;  %v385_v41 = vrot.slane %v353_v33, 2 }
 0x1cc   :  { %v343_v45 = vpop.permute.xlu0 %342  ;;  %v345_v44 = vpop.permute.xlu1 %344 }
 0x1cd   :  { %v367_v51 = vsel %vm364_vm5, %v365_v34, %v366_v40  ;;  %v369_v52 = vsel %vm364_vm5, %v366_v40, %v368_v38  ;;  %v356_v54 = vadd.f32 %v343_v45, %v332_v42  ;;  %v357_v55 = vadd.f32 %v345_v44, %v333_v43 }
 0x1ce   :  { %v379_v35 = vadd.f32 %v367_v51, %v352_v25  ;;  %v380_v53 = vadd.f32 %v369_v52, %v353_v33  ;;  %v386_v57 = vsel %vm383_vm6, %v384_v46, %v385_v41  ;;  %v388_v58 = vsel %vm383_vm6, %v385_v41, %v387_v39 }
 0x1cf   :  { %v371_v48 = vrot.slane %v356_v54, 1  ;;  %v390_v59 = vrot.slane %v356_v54, 2  ;;  %v373_v49 = vrot.slane %v357_v55, 1  ;;  %v392_v60 = vrot.slane %v357_v55, 2 }
 0x1d0   :  { %v399_v47 = vadd.f32 %v388_v58, %v380_v53  ;;  %v398_v50 = vadd.f32 %v386_v57, %v379_v35 }
 0x1d1   :  { %v372_v0 = vsel %vm364_vm5, %v370_v56, %v371_v48  ;;  %v374_v1 = vsel %vm364_vm5, %v371_v48, %v373_v49  ;;  %v391_v5 = vsel %vm383_vm6, %v389_v61, %v390_v59  ;;  %v393_v6 = vsel %vm383_vm6, %v390_v59, %v392_v60 }
 0x1d2   :  { %v403_v62 = vmul.f32 0.027777778, %v399_v47  ;;  %v381_v2 = vadd.f32 %v372_v0, %v355_v37  ;;  %v382_v3 = vadd.f32 %v374_v1, %v356_v54  ;;  %v402_v4 = vmul.f32 0.027777778, %v398_v50 }
 0x1d4   :  { %v401_v7 = vadd.f32 %v393_v6, %v382_v3  ;;  %v413_v8 = vrot.slane %v402_v4, %v951_v10  ;;  %v400_v9 = vadd.f32 %v391_v5, %v381_v2  ;;  %v462_v11 = vrot.slane %v403_v62, %v951_v10 }
 0x1d5   :  { %v406_v29 = vcombine.high %v402_v4, %v864_v36  ;;  %v455_v31 = vcombine.high %v403_v62, %v864_v36 }
 0x1d6   :  { %v405_v12 = vmul.f32 0.027777778, %v401_v7  ;;  %v997_v13 = vrot.slane %v413_v8, %v960_v26  ;;  %v404_v14 = vmul.f32 0.027777778, %v400_v9  ;;  %v1003_v17 = vrot.slane %v462_v11, %v960_v26 }
 0x1d7   :  { %v421_v22 = vcombine.high %v413_v8, %v864_v36  ;;  %v470_v24 = vcombine.high %v462_v11, %v864_v36  ;;  %v420_v33 = vrot.slane %v406_v29, %v951_v10  ;;  %v469_v38 = vrot.slane %v455_v31, %v951_v10 }
 0x1d8   :  { %v451_v15 = vcombine.high %v997_v13, %v864_v36  ;;  %v511_v16 = vrot.slane %v404_v14, %v951_v10  ;;  %v560_v18 = vrot.slane %v405_v12, %v951_v10  ;;  %v500_v21 = vcombine.high %v1003_v17, %v864_v36 }
 0x1d9   :  { %v435_v25 = vrot.slane %v421_v22, %v960_v26  ;;  %v484_v30 = vrot.slane %v470_v24, %v960_v26  ;;  %v504_v37 = vcombine.high %v404_v14, %v864_v36  ;;  %v443_v39 = vrot.slane %v420_v33, %v960_v26 }
 0x1da   :  { %604 = vrot.lane.b32.xlu0 %v451_v15, %s863_s25  ;;  %v1008_v19 = vrot.slane %v511_v16, %v960_v26  ;;  %v1016_v23 = vrot.slane %v560_v18, %v960_v26  ;;  %v519_v28 = vcombine.high %v511_v16, %v864_v36  ;;  %v568_v34 = vcombine.high %v560_v18, %v864_v36 }
 0x1db   :  { %v518_v41 = vrot.slane %v504_v37, %v951_v10  ;;  %v553_v42 = vcombine.high %v405_v12, %v864_v36  ;;  %v492_v43 = vrot.slane %v469_v38, %v960_v26  ;;  %v452_v46 = vcombine.high %v435_v25, %v864_v36 }
 0x1dc   :  { %v549_v20 = vcombine.high %v1008_v19, %v864_v36  ;;  %v598_v27 = vcombine.high %v1016_v23, %v864_v36  ;;  %v533_v32 = vrot.slane %v519_v28, %v960_v26  ;;  %v582_v40 = vrot.slane %v568_v34, %v960_v26 }
 0x1dd   :  { %v541_v45 = vrot.slane %v518_v41, %v960_v26  ;;  %v567_v44 = vrot.slane %v553_v42, %v951_v10  ;;  %v501_v52 = vcombine.high %v484_v30, %v864_v36  ;;  %v453_v10 = vcombine.high %v443_v39, %v864_v36 }
 0x1de   :  { %606 = vrot.lane.b32.xlu1 %v549_v20, %s863_s25  ;;  %660 = vrot.lane.b32.xlu0 %v500_v21, %s863_s25  ;;  %v550_v35 = vcombine.high %v533_v32, %v864_v36  ;;  %v599_v53 = vcombine.high %v582_v40, %v864_v36  ;;  %v502_v54 = vcombine.high %v492_v43, %v864_v36 }
 0x1df   :  { %v590_v51 = vrot.slane %v567_v44, %v960_v26  ;;  %v551_v55 = vcombine.high %v541_v45, %v864_v36  ;;  %v436_v56 = vcombine.high %v420_v33, %v864_v36  ;;  %v485_v47 = vcombine.high %v469_v38, %v864_v36 }
 0x1e0   :  { %v534_v48 = vcombine.high %v518_v41, %v864_v36  ;;  %v583_v60 = vcombine.high %v567_v44, %v864_v36  ;;  %v751_v38 = vsub.s32 0, %v945_v63 }
 0x1e1   :  { %v450_v57 = vrot.slane %v436_v56, %v960_v26  ;;  %v600_v58 = vcombine.high %v590_v51, %v864_v36  ;;  %v499_v59 = vrot.slane %v485_v47, %v960_v26 }
 0x1e2   :  { %612 = vrot.lane.b32.xlu0 %v435_v25, %s861_s23  ;;  %662 = vrot.lane.b32.xlu1 %v598_v27, %s863_s25  ;;  %v548_v49 = vrot.slane %v534_v48, %v960_v26  ;;  %v597_v61 = vrot.slane %v583_v60, %v960_v26 }
 0x1e3   :  { %v454_v50 = vcombine.high %v450_v57, %v864_v36  ;;  %v503_v62 = vcombine.high %v499_v59, %v864_v36 }
 0x1e4   :  { %v552_v0 = vcombine.high %v548_v49, %v864_v36  ;;  %v601_v1 = vcombine.high %v597_v61, %v864_v36 }
 0x1e6   :  { %668 = vrot.lane.b32.xlu0 %v484_v30, %s861_s23  ;;  %614 = vrot.lane.b32.xlu1 %v533_v32, %s861_s23 }
 0x1ea   :  { %628 = vrot.lane.b32.xlu0 %v443_v39, %s859_s21  ;;  %670 = vrot.lane.b32.xlu1 %v582_v40, %s861_s23 }
 0x1ee   :  { %684 = vrot.lane.b32.xlu0 %v492_v43, %s859_s21  ;;  %630 = vrot.lane.b32.xlu1 %v541_v45, %s859_s21 }
 0x1f2   :  { %620 = vrot.lane.b32.xlu0 %v452_v46, %s862_s24  ;;  %686 = vrot.lane.b32.xlu1 %v590_v51, %s859_s21 }
 0x1f6   :  { %676 = vrot.lane.b32.xlu0 %v501_v52, %s862_s24  ;;  %622 = vrot.lane.b32.xlu1 %v550_v35, %s862_s24 }
 0x1fa   :  { %636 = vrot.lane.b32.xlu0 %v453_v10, %s857_s0  ;;  %678 = vrot.lane.b32.xlu1 %v599_v53, %s862_s24 }
 0x1fe   :  { %692 = vrot.lane.b32.xlu0 %v502_v54, %s857_s0  ;;  %638 = vrot.lane.b32.xlu1 %v551_v55, %s857_s0 }
 0x202   :  { %644 = vrot.lane.b32.xlu0 %v450_v57, %s860_s22  ;;  %694 = vrot.lane.b32.xlu1 %v600_v58, %s857_s0 }
 0x206   :  { %700 = vrot.lane.b32.xlu0 %v499_v59, %s860_s22  ;;  %646 = vrot.lane.b32.xlu1 %v548_v49, %s860_s22 }
 0x20a   :  { %652 = vrot.lane.b32.xlu0 %v454_v50, %s858_s20  ;;  %702 = vrot.lane.b32.xlu1 %v597_v61, %s860_s22 }
 0x20e   :  { %708 = vrot.lane.b32.xlu0 %v503_v62, %s858_s20  ;;  %654 = vrot.lane.b32.xlu1 %v552_v0, %s858_s20 }
 0x212   :  { %710 = vrot.lane.b32.xlu1 %v601_v1, %s858_s20 }
 0x24c   :  { %v605_v2 = vpop.permute.xlu0 %604 }
 0x24d   :  { %v715_v27 = vsel %vm714_vm7, %v997_v13, %v605_v2 }
 0x250   :  { %v661_v3 = vpop.permute.xlu0 %660  ;;  %v607_v4 = vpop.permute.xlu1 %606 }
 0x251   :  { %v735_v32 = vsel %vm714_vm7, %v1003_v17, %v661_v3  ;;  %v716_v33 = vsel %vm714_vm7, %v1008_v19, %v607_v4 }
 0x254   :  { %v613_v26 = vpop.permute.xlu0 %612  ;;  %v663_v5 = vpop.permute.xlu1 %662 }
 0x255   :  { %v718_v28 = vsel %vm717_vm8, %v715_v27, %v613_v26  ;;  %v736_v43 = vsel %vm714_vm7, %v1016_v23, %v663_v5 }
 0x258   :  { %v669_v6 = vpop.permute.xlu0 %668  ;;  %v615_v7 = vpop.permute.xlu1 %614 }
 0x259   :  { %v737_v34 = vsel %vm717_vm8, %v735_v32, %v669_v6  ;;  %v719_v13 = vsel %vm717_vm8, %v716_v33, %v615_v7 }
 0x25c   :  { %v629_v8 = vpop.permute.xlu0 %628  ;;  %v671_v9 = vpop.permute.xlu1 %670 }
 0x25d   :  { %v738_v44 = vsel %vm717_vm8, %v736_v43, %v671_v9 }
 0x260   :  { %v685_v11 = vpop.permute.xlu0 %684  ;;  %v631_v12 = vpop.permute.xlu1 %630 }
 0x264   :  { %v621_v14 = vpop.permute.xlu0 %620  ;;  %v687_v15 = vpop.permute.xlu1 %686 }
 0x265   :  { %v721_v29 = vsel %vm720_vm9, %v718_v28, %v621_v14 }
 0x266   :  { %v724_v37 = vsel %vm723_vm10, %v721_v29, %v629_v8 }
 0x268   :  { %v677_v16 = vpop.permute.xlu0 %676  ;;  %v623_v18 = vpop.permute.xlu1 %622 }
 0x269   :  { %v739_v39 = vsel %vm720_vm9, %v737_v34, %v677_v16  ;;  %v722_v40 = vsel %vm720_vm9, %v719_v13, %v623_v18 }
 0x26a   :  { %v741_v46 = vsel %vm723_vm10, %v739_v39, %v685_v11  ;;  %v725_v63 = vsel %vm723_vm10, %v722_v40, %v631_v12 }
 0x26c   :  { %v637_v20 = vpop.permute.xlu0 %636  ;;  %v679_v21 = vpop.permute.xlu1 %678 }
 0x26d   :  { %v727_v41 = vsel %vm726_vm11, %v724_v37, %v637_v20  ;;  %v740_v52 = vsel %vm720_vm9, %v738_v44, %v679_v21 }
 0x26e   :  { %v742_v58 = vsel %vm723_vm10, %v740_v52, %v687_v15 }
 0x270   :  { %v693_v36 = vpop.permute.xlu0 %692  ;;  %v639_v22 = vpop.permute.xlu1 %638 }
 0x271   :  { %v743_v35 = vsel %vm726_vm11, %v741_v46, %v693_v36  ;;  %v728_v10 = vsel %vm726_vm11, %v725_v63, %v639_v22 }
 0x274   :  { %v645_v24 = vpop.permute.xlu0 %644  ;;  %v695_v25 = vpop.permute.xlu1 %694 }
 0x275   :  { %v730_v17 = vsel %vm729_vm12, %v727_v41, %v645_v24  ;;  %v744_v59 = vsel %vm726_vm11, %v742_v58, %v695_v25 }
 0x278   :  { %v701_v30 = vpop.permute.xlu0 %700  ;;  %v647_v31 = vpop.permute.xlu1 %646 }
 0x279   :  { %v745_v53 = vsel %vm729_vm12, %v743_v35, %v701_v30  ;;  %v731_v54 = vsel %vm729_vm12, %v728_v10, %v647_v31 }
 0x27c   :  { %v653_v42 = vpop.permute.xlu0 %652  ;;  %v703_v19 = vpop.permute.xlu1 %702 }
 0x27d   :  { %v733_v45 = vsel %vm732_vm13, %v730_v17, %v653_v42  ;;  %v746_v49 = vsel %vm729_vm12, %v744_v59, %v703_v19 }
 0x27e   :  { %v752_v51 = vrot.slane %v733_v45, %v751_v38 }
 0x280   :  { %765 = vst [vmem:[#allocation6] sm:$0xff] %v752_v51  ;;  %v709_v23 = vpop.permute.xlu0 %708  ;;  %v655_v55 = vpop.permute.xlu1 %654 }
 0x281   :  { %v747_v56 = vsel %vm732_vm13, %v745_v53, %v709_v23  ;;  %v734_v57 = vsel %vm732_vm13, %v731_v54, %v655_v55 }
 0x282   :  { %v756_v47 = vrot.slane %v747_v56, %v751_v38  ;;  %v760_v48 = vrot.slane %v734_v57, %v751_v38 }
 0x284   :  { %766 = vst [vmem:[#allocation6 + $0x8] sm:$0xff] %v756_v47  ;;  %767 = vst [vmem:[#allocation6 + $0x10] sm:$0xff] %v760_v48  ;;  %v711_v60 = vpop.permute.xlu1 %710 }
 0x285   :  { %v748_v50 = vsel %vm732_vm13, %v746_v49, %v711_v60 }
 0x286   :  { %v764_v61 = vrot.slane %v748_v50, %v751_v38 }
 0x288   :  { %768 = vst [vmem:[#allocation6 + $0x18] sm:$0xff] %v764_v61 }
 0x289   :  { %839 = shalt.err (!%p836_p12)
}
 0x28a   :  { %s840_s5 = scalar_lea.hbm %s1133_s1, 512 }
 0x28b   :  { %p841_p13 = scmp.ne.s32.totalorder %s1133_s1, %s840_s5  ;;  %p844_p0 = scmp.lt.u32.totalorder %s840_s5, %s1133_s1 }
 0x28d   :  { %p846_p1 = pnand %p844_p0, %p841_p13 }
 0x28f   :  { %849 = shalt.err (!%p846_p1)
}
 0x290   :  { %s871_s10 = smov 256  }
 0x291   :  { %780 = dma.vmem_to_hbm [thread:$0]  %s775_s30, 512, %s1133_s1, [#allocation5], %s871_s10, %s871_s10, %s863_s25  }
 0x292   :  { %852 = dma.done.wait [#allocation5], 512  }
 0x293   :  { %853 = vsyncadd [#allocation5], 4294966784 }
 0x294   :  { %784 = vsyncpa [#allocation4], 1 }
 0x295   :  { %785 = vsyncpa [#allocation5], 1 }

</bundles_post_ra>
